<compile_context>
chip_gen: v6e
topology: v6e:2x2x1
jax: 0.10.0
libtpu: 0.0.40
codegen_flags: <defaults>
</compile_context>

<pallas_src>
import functools

import jax
import jax.numpy as jnp
from jax.experimental import pallas as pl
from jax.experimental.pallas import tpu as pltpu

LANE = 128
SUBLANE = 8
NEG_SLOPE = 0.4  # matches Dense(..., negative_slope=0.4)


def _round_up(n, m):
    return ((n + m - 1) // m) * m


def _make_fused_kernel(n_layers, use_bf16):
    """Kernel body: x tile + n_layers * (W, b) full blocks -> output tile."""

    def kernel(x_ref, *refs):
        o_ref = refs[-1]
        h = x_ref[...]
        for l in range(n_layers):
            w = refs[2 * l][...]
            b = refs[2 * l + 1][...]
            if use_bf16:
                # bf16 MXU operands, f32 accumulation (v6e / v7x native MXU dtype).
                y = jnp.dot(h.astype(jnp.bfloat16), w.astype(jnp.bfloat16),
                            preferred_element_type=jnp.float32)
            else:
                y = jnp.dot(h, w, preferred_element_type=jnp.float32)
            y = y + b                           # bias broadcast over rows (VPU, f32)
            h = jnp.maximum(y, NEG_SLOPE * y)   # LeakyReLU(0.4): slope < 1 => max form
        o_ref[...] = h.astype(o_ref.dtype)

    return kernel


def encoder_forward(x, params, *, batch_tile=128, use_bf16=False):
    """Fused Encoder forward.

    x:      [B, Din] float32
    params: list of (W, b) with W: [Din_l, Dout_l] (already transposed vs. torch), b: [Dout_l]
    """
    B, Din = x.shape
    n_layers = len(params)
    dims = [Din] + [w.shape[1] for w, _ in params]
    pdims = [_round_up(d, LANE) for d in dims]

    # Zero-pad weights/biases to 128-lane multiples (exact math, see header comment).
    flat = []
    for l, (w, b) in enumerate(params):
        wp = jnp.zeros((pdims[l], pdims[l + 1]), jnp.float32)
        wp = wp.at[: dims[l], : dims[l + 1]].set(w.astype(jnp.float32))
        bp = jnp.zeros((1, pdims[l + 1]), jnp.float32)
        bp = bp.at[:, : dims[l + 1]].set(b.reshape(1, -1).astype(jnp.float32))
        flat += [wp, bp]

    # Pad batch to a sublane multiple and choose a batch tile.
    b_pad = _round_up(B, SUBLANE)
    tb = min(batch_tile, b_pad)
    b_pad = _round_up(b_pad, tb)
    x_pad = jnp.zeros((b_pad, pdims[0]), jnp.float32).at[:B, :Din].set(x.astype(jnp.float32))

    kernel = _make_fused_kernel(n_layers, use_bf16)
    out_shape = jax.ShapeDtypeStruct((b_pad, pdims[-1]), jnp.float32)
    n_tiles = b_pad // tb

    if n_tiles == 1:
        # Whole (padded) problem is one block: no grid, no pipeline machinery.
        out = pl.pallas_call(kernel, out_shape=out_shape)(x_pad, *flat)
    else:
        # Batch-tiled path: weights/bias stay resident (block index (0,0) for every step),
        # batch axis is "parallel" so v7x's two TensorCores can split it.
        in_specs = [pl.BlockSpec((tb, pdims[0]), lambda i: (i, 0))]
        for l in range(n_layers):
            in_specs.append(pl.BlockSpec((pdims[l], pdims[l + 1]), lambda i: (0, 0)))
            in_specs.append(pl.BlockSpec((1, pdims[l + 1]), lambda i: (0, 0)))
        out = pl.pallas_call(
            kernel,
            out_shape=out_shape,
            grid=(n_tiles,),
            in_specs=in_specs,
            out_specs=pl.BlockSpec((tb, pdims[-1]), lambda i: (i, 0)),
            compiler_params=pltpu.CompilerParams(
                dimension_semantics=("parallel",),
                vmem_limit_bytes=64 << 20,  # headroom-safe on v7x's smaller VMEM
            ),
        )(x_pad, *flat)

    return out[:B, : dims[-1]]


def init_encoder_params(key, input_dim, dims):
    """xavier_uniform weights (as in nn.init.xavier_uniform_) + zero biases.

    PyTorch Linear weight is (Dout, Din); we store its transpose (Din, Dout) so the
    kernel computes x @ W + b.
    """
    all_dims = (input_dim,) + tuple(dims)
    params = []
    for i in range(len(all_dims) - 1):
        din, dout = all_dims[i], all_dims[i + 1]
        key, sub = jax.random.split(key)
        bound = (6.0 / (din + dout)) ** 0.5
        w = jax.random.uniform(sub, (din, dout), jnp.float32, -bound, bound)
        b = jnp.zeros((dout,), jnp.float32)
        params.append((w, b))
    return params


def encoder_forward_ref(x, params):
    # plain-JAX reference
    for w, b in params:
        y = x @ w + b.reshape(1, -1)
        x = jnp.where(y >= 0, y, NEG_SLOPE * y)
    return x


if __name__ == "__main__":
    key = jax.random.PRNGKey(0)
    input_dim = 32
    dims = (64, 32, 16)  # Encoder(input_dim, 64, 32, 16)

    kx, kp, kx2 = jax.random.split(key, 3)
    params = init_encoder_params(kp, input_dim, dims)

    # Small batch: exercises the no-grid (single-block) fused path.
    x = jax.random.normal(kx, (8, input_dim), jnp.float32)
    out = jax.block_until_ready(encoder_forward(x, params))
    ref = encoder_forward_ref(x, params)
    assert out.shape == (8, dims[-1])
    assert jnp.allclose(out, ref, atol=1e-5, rtol=1e-5)

    # Larger batch: exercises the batch-tiled "parallel" grid path (weights resident).
    x2 = jax.random.normal(kx2, (160, input_dim), jnp.float32)
    out2 = jax.block_until_ready(encoder_forward(x2, params, batch_tile=128))
    ref2 = encoder_forward_ref(x2, params)
    assert out2.shape == (160, dims[-1])
    assert jnp.allclose(out2, ref2, atol=1e-5, rtol=1e-5)

    print("KERNEL_OK")
</pallas_src>

<mosaic_0001>
module attributes {stable_mosaic.version = 11 : i64} {
  func.func @kernel(%arg0: memref<8x128xf32, #tpu.memory_space<vmem>>, %arg1: memref<128x128xf32, #tpu.memory_space<vmem>>, %arg2: memref<1x128xf32, #tpu.memory_space<vmem>>, %arg3: memref<128x128xf32, #tpu.memory_space<vmem>>, %arg4: memref<1x128xf32, #tpu.memory_space<vmem>>, %arg5: memref<128x128xf32, #tpu.memory_space<vmem>>, %arg6: memref<1x128xf32, #tpu.memory_space<vmem>>, %arg7: memref<8x128xf32, #tpu.memory_space<vmem>>) attributes {dimension_semantics = [], scalar_prefetch = 0 : i64, scratch_operands = 0 : i64, tpu.core_type = #tpu.core_type<tc>} {
    %c0 = arith.constant 0 : index
    %c0_0 = arith.constant 0 : index
    %0 = vector.load %arg0[%c0, %c0_0] : memref<8x128xf32, #tpu.memory_space<vmem>>, vector<8x128xf32>
    %c0_1 = arith.constant 0 : index
    %c0_2 = arith.constant 0 : index
    %1 = vector.load %arg1[%c0_1, %c0_2] : memref<128x128xf32, #tpu.memory_space<vmem>>, vector<128x128xf32>
    %c0_3 = arith.constant 0 : index
    %c0_4 = arith.constant 0 : index
    %2 = vector.load %arg2[%c0_3, %c0_4] : memref<1x128xf32, #tpu.memory_space<vmem>>, vector<1x128xf32>
    %cst = arith.constant dense<0.000000e+00> : vector<8x128xf32>
    %3 = tpu.matmul %0, %1, %cst {dimension_numbers = #tpu.dot_dimension_numbers<[1], [0], [0], [1], [0, 0, 1, 1], [], []>} : vector<8x128xf32>, vector<128x128xf32>, vector<8x128xf32> -> vector<8x128xf32>
    %4 = vector.broadcast %2 : vector<1x128xf32> to vector<8x128xf32>
    %5 = arith.addf %3, %4 : vector<8x128xf32>
    %cst_5 = arith.constant 4.000000e-01 : f32
    %6 = vector.broadcast %cst_5 : f32 to vector<8x128xf32>
    %7 = arith.mulf %6, %5 : vector<8x128xf32>
    %8 = arith.maximumf %5, %7 : vector<8x128xf32>
    %c0_6 = arith.constant 0 : index
    %c0_7 = arith.constant 0 : index
    %9 = vector.load %arg3[%c0_6, %c0_7] : memref<128x128xf32, #tpu.memory_space<vmem>>, vector<128x128xf32>
    %c0_8 = arith.constant 0 : index
    %c0_9 = arith.constant 0 : index
    %10 = vector.load %arg4[%c0_8, %c0_9] : memref<1x128xf32, #tpu.memory_space<vmem>>, vector<1x128xf32>
    %cst_10 = arith.constant dense<0.000000e+00> : vector<8x128xf32>
    %11 = tpu.matmul %8, %9, %cst_10 {dimension_numbers = #tpu.dot_dimension_numbers<[1], [0], [0], [1], [0, 0, 1, 1], [], []>} : vector<8x128xf32>, vector<128x128xf32>, vector<8x128xf32> -> vector<8x128xf32>
    %12 = vector.broadcast %10 : vector<1x128xf32> to vector<8x128xf32>
    %13 = arith.addf %11, %12 : vector<8x128xf32>
    %cst_11 = arith.constant 4.000000e-01 : f32
    %14 = vector.broadcast %cst_11 : f32 to vector<8x128xf32>
    %15 = arith.mulf %14, %13 : vector<8x128xf32>
    %16 = arith.maximumf %13, %15 : vector<8x128xf32>
    %c0_12 = arith.constant 0 : index
    %c0_13 = arith.constant 0 : index
    %17 = vector.load %arg5[%c0_12, %c0_13] : memref<128x128xf32, #tpu.memory_space<vmem>>, vector<128x128xf32>
    %c0_14 = arith.constant 0 : index
    %c0_15 = arith.constant 0 : index
    %18 = vector.load %arg6[%c0_14, %c0_15] : memref<1x128xf32, #tpu.memory_space<vmem>>, vector<1x128xf32>
    %cst_16 = arith.constant dense<0.000000e+00> : vector<8x128xf32>
    %19 = tpu.matmul %16, %17, %cst_16 {dimension_numbers = #tpu.dot_dimension_numbers<[1], [0], [0], [1], [0, 0, 1, 1], [], []>} : vector<8x128xf32>, vector<128x128xf32>, vector<8x128xf32> -> vector<8x128xf32>
    %20 = vector.broadcast %18 : vector<1x128xf32> to vector<8x128xf32>
    %21 = arith.addf %19, %20 : vector<8x128xf32>
    %cst_17 = arith.constant 4.000000e-01 : f32
    %22 = vector.broadcast %cst_17 : f32 to vector<8x128xf32>
    %23 = arith.mulf %22, %21 : vector<8x128xf32>
    %24 = arith.maximumf %21, %23 : vector<8x128xf32>
    %c0_18 = arith.constant 0 : index
    %c0_19 = arith.constant 0 : index
    %25 = vector.load %arg7[%c0_18, %c0_19] : memref<8x128xf32, #tpu.memory_space<vmem>>, vector<8x128xf32>
    tpu.vector_store %arg7[%c0_18, %c0_19], %24 {strides = array<i32>} : memref<8x128xf32, #tpu.memory_space<vmem>>, vector<8x128xf32>,
    return
  }
}

</mosaic_0001>

<bundles_post_ra>
// kernel: tpu_custom_call.1
= control target key start
LH: loop header
LB: loop body
LE: loop exit
PB: predicated region body
PF: predicated region fallthrough
CT: control target
= control target key end

     0   :  { %12 = vsyncpa [#allocation3], 0  ;;  %s796_s0 = inlined_call_operand.hbm [shape: f32[8,128], index: 0, kind: input, shape index: {}]   ;;  %s797_s1 = inlined_call_operand.hbm [shape: f32[128,128], index: 1, kind: input, shape index: {}]   ;;  %s798_s2 = inlined_call_operand.vmem [shape: f32[1,128], index: 2, kind: input, shape index: {}]   ;;  %s799_s3 = inlined_call_operand.hbm [shape: f32[128,128], index: 3, kind: input, shape index: {}]   ;;  %s800_s4 = inlined_call_operand.vmem [shape: f32[1,128], index: 4, kind: input, shape index: {}]   ;;  %s801_s5 = inlined_call_operand.hbm [shape: f32[128,128], index: 5, kind: input, shape index: {}]   ;;  %s802_s6 = inlined_call_operand.vmem [shape: f32[1,128], index: 6, kind: input, shape index: {}]   ;;  %s803_s7 = inlined_call_operand.hbm [shape: f32[8,128], index: 7, kind: output, shape index: {}]  }
   0x1   :  { %13 = vsyncpa [#allocation6], 0 }
   0x2   :  { %14 = vsyncpa [#allocation9], 0 }
   0x3   :  { %15 = vsyncpa [#allocation4], 0  ;;  %s660_s24 = smov [#allocation5]  }
   0x4   :  { %s31_s25 = sshll.u32 %s660_s24, 4  ;;  %s32_s25 = int_to_ptr.vmem [resolvable:$true] %s31_s25 }
   0x5   :  { %s560_s26 = scalar_lea.vmem %s32_s25, 2048  ;;  %p565_p1 = scmp.lt.s32.totalorder %s32_s25, %s32_s25 }
   0x6   :  { %p561_p0 = scmp.ne.s32.totalorder %s32_s25, %s560_s26  ;;  %p566_p2 = scmp.lt.s32.totalorder %s560_s26, %s560_s26 }
   0x8   :  { %p567_p3 = por %p566_p2, %p565_p1 }
   0xa   :  { %p568_p4 = pnand %p567_p3, %p561_p0 }
   0xc   :  { %571 = shalt.err (!%p568_p4)
}
   0xd   :  { %s661_s27 = smov 128   ;;  %s662_s28 = smov 8  }
   0xe   :  { %37 = dma.hbm_to_vmem [thread:$0]  %s797_s1, 2048, %s32_s25, [#allocation6], %s661_s27, %s661_s27, %s662_s28  }
   0xf   :  { %s663_s8 = smov [#allocation2]   ;;  %s664_s10 = smov [#allocation7]  }
  0x10   :  { %s22_s9 = sshll.u32 %s663_s8, 4  ;;  %s45_s11 = sshll.u32 %s664_s10, 4  ;;  %s23_s9 = int_to_ptr.vmem [resolvable:$true] %s22_s9  ;;  %s46_s11 = int_to_ptr.vmem [resolvable:$true] %s45_s11 }
  0x11   :  { %s580_s12 = scalar_lea.vmem %s23_s9, 128  ;;  %p585_p6 = scmp.lt.s32.totalorder %s23_s9, %s23_s9 }
  0x12   :  { %p581_p5 = scmp.ne.s32.totalorder %s23_s9, %s580_s12  ;;  %p586_p7 = scmp.lt.s32.totalorder %s580_s12, %s580_s12 }
  0x14   :  { %p587_p8 = por %p586_p7, %p585_p6 }
  0x16   :  { %p588_p9 = pnand %p587_p8, %p581_p5 }
  0x18   :  { %591 = shalt.err (!%p588_p9)
}
  0x19   :  { %25 = dma.hbm_to_vmem [thread:$0]  %s796_s0, 128, %s23_s9, [#allocation3]  }
  0x1a   :  { %s600_s15 = scalar_lea.vmem %s46_s11, 2048  ;;  %p605_p11 = scmp.lt.s32.totalorder %s46_s11, %s46_s11 }
  0x1b   :  { %p601_p10 = scmp.ne.s32.totalorder %s46_s11, %s600_s15  ;;  %p606_p12 = scmp.lt.s32.totalorder %s600_s15, %s600_s15 }
  0x1d   :  { %p607_p13 = por %p606_p12, %p605_p11 }
  0x1f   :  { %p608_p0 = pnand %p607_p13, %p601_p10 }
  0x21   :  { %611 = shalt.err (!%p608_p0)
}
  0x22   :  { %51 = dma.hbm_to_vmem [thread:$0]  %s799_s3, 2048, %s46_s11, [#allocation6], %s661_s27, %s661_s27, %s662_s28  }
  0x23   :  { %s665_s17 = smov [#allocation8]  }
  0x24   :  { %s59_s18 = sshll.u32 %s665_s17, 4  ;;  %s60_s18 = int_to_ptr.vmem [resolvable:$true] %s59_s18 }
  0x25   :  { %s620_s19 = scalar_lea.vmem %s60_s18, 2048  ;;  %p625_p2 = scmp.lt.s32.totalorder %s60_s18, %s60_s18 }
  0x26   :  { %p621_p1 = scmp.ne.s32.totalorder %s60_s18, %s620_s19  ;;  %p626_p3 = scmp.lt.s32.totalorder %s620_s19, %s620_s19 }
  0x28   :  { %p627_p4 = por %p626_p3, %p625_p2 }
  0x2a   :  { %p628_p5 = pnand %p627_p4, %p621_p1 }
  0x2c   :  { %631 = shalt.err (!%p628_p5)
}
  0x2d   :  { %65 = dma.hbm_to_vmem [thread:$0]  %s801_s5, 2048, %s60_s18, [#allocation9], %s661_s27, %s661_s27, %s662_s28  }
  0x2e   :  { %652 = dma.done.wait [#allocation3], 128  }
  0x2f   :  { %653 = vsyncadd [#allocation3], 4294967168 }
  0x30   :  { %654 = dma.done.wait [#allocation6], 4096  }
  0x31   :  { %655 = vsyncadd [#allocation6], 4294963200 }
  0x32   :  { %656 = dma.done.wait [#allocation9], 2048  }
  0x33   :  { %657 = vsyncadd [#allocation9], 4294965248  ;;  %v666_v0 = vmov 0.0   ;;  %vm667_vm0 = vmmov 0   ;;  %v96_v1 = vld [vmem:[#allocation5 + $0x78] sm:$0xff]  ;;  %v95_v2 = vld [vmem:[#allocation5 + $0x70] sm:$0xff] }
  0x34   :  { %438 = vmatprep.subr.mxu0 %v666_v0  ;;  %470 = vmatprep.mubr.msk.f32.mxu0 %vm667_vm0, %v666_v0  ;;  %v94_v3 = vld [vmem:[#allocation5 + $0x68] sm:$0xff]  ;;  %v93_v4 = vld [vmem:[#allocation5 + $0x60] sm:$0xff]  ;;  %v191_v5 = vld [vmem:[#allocation7 + $0x78] sm:$0xff]  ;;  %s668_s24 = smov [#allocation10]  }
  0x35   :  { %473 = vmatprep.subr.mxu1 %v666_v0  ;;  %505 = vmatprep.mubr.msk.f32.mxu1 %vm667_vm0, %v666_v0  ;;  %v92_v6 = vld [vmem:[#allocation5 + $0x58] sm:$0xff]  ;;  %v190_v7 = vld [vmem:[#allocation7 + $0x70] sm:$0xff]  ;;  %v189_v8 = vld [vmem:[#allocation7 + $0x68] sm:$0xff]  ;;  %s373_s25 = sshll.u32 %s668_s24, 4  ;;  %s374_s25 = int_to_ptr.vmem [resolvable:$true] %s373_s25 }
  0x36   :  { %439 = vmatpush3.msra.mxu0 %v96_v1  ;;  %474 = vmatpush3.msra.mxu1 %v191_v5  ;;  %v91_v9 = vld [vmem:[#allocation5 + $0x50] sm:$0xff]  ;;  %v188_v10 = vld [vmem:[#allocation7 + $0x60] sm:$0xff]  ;;  %v90_v11 = vld [vmem:[#allocation5 + $0x48] sm:$0xff]  ;;  %p637_p7 = scmp.lt.s32.totalorder %s374_s25, %s374_s25 }
  0x37   :  { %440 = vmatprep.subr.mxu0 %v666_v0  ;;  %475 = vmatprep.subr.mxu1 %v666_v0  ;;  %v187_v12 = vld [vmem:[#allocation7 + $0x58] sm:$0xff]  ;;  %v89_v13 = vld [vmem:[#allocation5 + $0x40] sm:$0xff]  ;;  %v186_v14 = vld [vmem:[#allocation7 + $0x50] sm:$0xff] }
  0x38   :  { %441 = vmatpush3.msra.mxu0 %v95_v2  ;;  %476 = vmatpush3.msra.mxu1 %v190_v7  ;;  %v88_v15 = vld [vmem:[#allocation5 + $0x38] sm:$0xff]  ;;  %v185_v16 = vld [vmem:[#allocation7 + $0x48] sm:$0xff]  ;;  %v87_v17 = vld [vmem:[#allocation5 + $0x30] sm:$0xff] }
  0x39   :  { %442 = vmatprep.subr.mxu0 %v666_v0  ;;  %477 = vmatprep.subr.mxu1 %v666_v0  ;;  %v184_v18 = vld [vmem:[#allocation7 + $0x40] sm:$0xff]  ;;  %v86_v19 = vld [vmem:[#allocation5 + $0x28] sm:$0xff]  ;;  %v183_v20 = vld [vmem:[#allocation7 + $0x38] sm:$0xff] }
  0x3a   :  { %443 = vmatpush3.msra.mxu0 %v94_v3  ;;  %478 = vmatpush3.msra.mxu1 %v189_v8  ;;  %v85_v21 = vld [vmem:[#allocation5 + $0x20] sm:$0xff]  ;;  %v182_v22 = vld [vmem:[#allocation7 + $0x30] sm:$0xff]  ;;  %v84_v23 = vld [vmem:[#allocation5 + $0x18] sm:$0xff] }
  0x3b   :  { %444 = vmatprep.subr.mxu0 %v666_v0  ;;  %479 = vmatprep.subr.mxu1 %v666_v0  ;;  %v181_v24 = vld [vmem:[#allocation7 + $0x28] sm:$0xff]  ;;  %v83_v25 = vld [vmem:[#allocation5 + $0x10] sm:$0xff]  ;;  %v180_v26 = vld [vmem:[#allocation7 + $0x20] sm:$0xff] }
  0x3c   :  { %445 = vmatpush3.msra.mxu0 %v93_v4  ;;  %480 = vmatpush3.msra.mxu1 %v188_v10  ;;  %v82_v27 = vld [vmem:[#allocation5 + $0x8] sm:$0xff]  ;;  %v81_v28 = vld [vmem:[#allocation5] sm:$0xff]  ;;  %v80_v29 = vld [vmem:[#allocation2] sm:$0xff] }
  0x3d   :  { %446 = vmatprep.subr.mxu0 %v666_v0  ;;  %481 = vmatprep.subr.mxu1 %v666_v0  ;;  %v179_v30 = vld [vmem:[#allocation7 + $0x18] sm:$0xff]  ;;  %v178_v31 = vld [vmem:[#allocation7 + $0x10] sm:$0xff]  ;;  %v177_v32 = vld [vmem:[#allocation7 + $0x8] sm:$0xff] }
  0x3e   :  { %447 = vmatpush3.msra.mxu0 %v92_v6  ;;  %482 = vmatpush3.msra.mxu1 %v187_v12  ;;  %v176_v33 = vld [vmem:[#allocation7] sm:$0xff]  ;;  %v286_v34 = vld [vmem:[#allocation8 + $0x78] sm:$0xff]  ;;  %v285_v35 = vld [vmem:[#allocation8 + $0x70] sm:$0xff] }
  0x3f   :  { %448 = vmatprep.subr.mxu0 %v666_v0  ;;  %483 = vmatprep.subr.mxu1 %v666_v0  ;;  %v284_v36 = vld [vmem:[#allocation8 + $0x68] sm:$0xff]  ;;  %v283_v37 = vld [vmem:[#allocation8 + $0x60] sm:$0xff]  ;;  %v282_v38 = vld [vmem:[#allocation8 + $0x58] sm:$0xff] }
  0x40   :  { %449 = vmatpush3.msra.mxu0 %v91_v9  ;;  %484 = vmatpush3.msra.mxu1 %v186_v14  ;;  %v281_v39 = vld [vmem:[#allocation8 + $0x50] sm:$0xff]  ;;  %v280_v40 = vld [vmem:[#allocation8 + $0x48] sm:$0xff]  ;;  %v279_v41 = vld [vmem:[#allocation8 + $0x40] sm:$0xff] }
  0x41   :  { %450 = vmatprep.subr.mxu0 %v666_v0  ;;  %485 = vmatprep.subr.mxu1 %v666_v0  ;;  %v278_v42 = vld [vmem:[#allocation8 + $0x38] sm:$0xff]  ;;  %v277_v43 = vld [vmem:[#allocation8 + $0x30] sm:$0xff]  ;;  %v276_v44 = vld [vmem:[#allocation8 + $0x28] sm:$0xff] }
  0x42   :  { %451 = vmatpush3.msra.mxu0 %v90_v11  ;;  %486 = vmatpush3.msra.mxu1 %v185_v16  ;;  %v275_v45 = vld [vmem:[#allocation8 + $0x20] sm:$0xff]  ;;  %v384_v46 = vld [vmem:[%s798_s2] ss:$0 sm:$0xff]  ;;  %v273_v53 = vld [vmem:[#allocation8 + $0x10] sm:$0xff] }
  0x43   :  { %452 = vmatprep.subr.mxu0 %v666_v0  ;;  %487 = vmatprep.subr.mxu1 %v666_v0  ;;  %v274_v52 = vld [vmem:[#allocation8 + $0x18] sm:$0xff]  ;;  %v272_v54 = vld [vmem:[#allocation8 + $0x8] sm:$0xff]  ;;  %v271_v55 = vld [vmem:[#allocation8] sm:$0xff] }
  0x44   :  { %453 = vmatpush3.msra.mxu0 %v89_v13  ;;  %488 = vmatpush3.msra.mxu1 %v184_v18  ;;  %v385_v56 = vld [vmem:[%s800_s4] ss:$0 sm:$0xff]  ;;  %s632_s4 = scalar_lea.vmem %s374_s25, 128 }
  0x45   :  { %454 = vmatprep.subr.mxu0 %v666_v0  ;;  %489 = vmatprep.subr.mxu1 %v666_v0  ;;  %v386_v62 = vld [vmem:[%s802_s6] ss:$0 sm:$0xff]  ;;  %p633_p6 = scmp.ne.s32.totalorder %s374_s25, %s632_s4  ;;  %p638_p8 = scmp.lt.s32.totalorder %s632_s4, %s632_s4 }
  0x46   :  { %455 = vmatpush3.msra.mxu0 %v88_v15  ;;  %490 = vmatpush3.msra.mxu1 %v183_v20 }
  0x47   :  { %456 = vmatprep.subr.mxu0 %v666_v0  ;;  %491 = vmatprep.subr.mxu1 %v666_v0  ;;  %p639_p9 = por %p638_p8, %p637_p7 }
  0x48   :  { %457 = vmatpush3.msra.mxu0 %v87_v17  ;;  %492 = vmatpush3.msra.mxu1 %v182_v22 }
  0x49   :  { %458 = vmatprep.subr.mxu0 %v666_v0  ;;  %493 = vmatprep.subr.mxu1 %v666_v0  ;;  %p640_p10 = pnand %p639_p9, %p633_p6 }
  0x4a   :  { %459 = vmatpush3.msra.mxu0 %v86_v19  ;;  %494 = vmatpush3.msra.mxu1 %v181_v24 }
  0x4b   :  { %460 = vmatprep.subr.mxu0 %v666_v0  ;;  %495 = vmatprep.subr.mxu1 %v666_v0 }
  0x4c   :  { %461 = vmatpush3.msra.mxu0 %v85_v21  ;;  %496 = vmatpush3.msra.mxu1 %v180_v26 }
  0x4d   :  { %462 = vmatprep.subr.mxu0 %v666_v0  ;;  %497 = vmatprep.subr.mxu1 %v666_v0 }
  0x4e   :  { %463 = vmatpush3.msra.mxu0 %v84_v23  ;;  %498 = vmatpush3.msra.mxu1 %v179_v30 }
  0x4f   :  { %464 = vmatprep.subr.mxu0 %v666_v0  ;;  %499 = vmatprep.subr.mxu1 %v666_v0 }
  0x50   :  { %465 = vmatpush3.msra.mxu0 %v83_v25  ;;  %500 = vmatpush3.msra.mxu1 %v178_v31 }
  0x51   :  { %466 = vmatprep.subr.mxu0 %v666_v0  ;;  %501 = vmatprep.subr.mxu1 %v666_v0 }
  0x52   :  { %467 = vmatpush3.msra.mxu0 %v82_v27  ;;  %502 = vmatpush3.msra.mxu1 %v177_v32 }
  0x53   :  { %468 = vmatprep.subr.mxu0 %v666_v0  ;;  %503 = vmatprep.subr.mxu1 %v666_v0 }
  0x54   :  { %469 = vmatpush3.msra.mxu0 %v81_v28  ;;  %504 = vmatpush3.msra.mxu1 %v176_v33 }
  0x55   :  { %471 = vmatmul.mubr.f32.vlgmr.msra.gmra.mxu0 %v80_v29  ;;  %508 = vmatprep.subr.mxu0 %v666_v0 }
  0x56   :  { %540 = vmatprep.mubr.msk.f32.mxu0 %vm667_vm0, %v666_v0  ;;  %509 = vmatpush3.msra.mxu0 %v286_v34 }
  0x57   :  { %510 = vmatprep.subr.mxu0 %v666_v0 }
  0x58   :  { %511 = vmatpush3.msra.mxu0 %v285_v35 }
  0x59   :  { %512 = vmatprep.subr.mxu0 %v666_v0 }
  0x5a   :  { %513 = vmatpush3.msra.mxu0 %v284_v36 }
  0x5b   :  { %514 = vmatprep.subr.mxu0 %v666_v0 }
  0x5c   :  { %515 = vmatpush3.msra.mxu0 %v283_v37 }
  0x5d   :  { %516 = vmatprep.subr.mxu0 %v666_v0 }
  0x5e   :  { %517 = vmatpush3.msra.mxu0 %v282_v38 }
  0x5f   :  { %518 = vmatprep.subr.mxu0 %v666_v0 }
  0x60   :  { %519 = vmatpush3.msra.mxu0 %v281_v39 }
  0x61   :  { %520 = vmatprep.subr.mxu0 %v666_v0 }
  0x62   :  { %521 = vmatpush3.msra.mxu0 %v280_v40 }
  0x63   :  { %522 = vmatprep.subr.mxu0 %v666_v0 }
  0x64   :  { %523 = vmatpush3.msra.mxu0 %v279_v41 }
  0x65   :  { %524 = vmatprep.subr.mxu0 %v666_v0 }
  0x66   :  { %525 = vmatpush3.msra.mxu0 %v278_v42 }
  0x67   :  { %526 = vmatprep.subr.mxu0 %v666_v0 }
  0x68   :  { %527 = vmatpush3.msra.mxu0 %v277_v43 }
  0x69   :  { %528 = vmatprep.subr.mxu0 %v666_v0 }
  0x6a   :  { %529 = vmatpush3.msra.mxu0 %v276_v44 }
  0x6b   :  { %530 = vmatprep.subr.mxu0 %v666_v0 }
  0x6c   :  { %531 = vmatpush3.msra.mxu0 %v275_v45 }
  0x6d   :  { %532 = vmatprep.subr.mxu0 %v666_v0 }
  0x6e   :  { %533 = vmatpush3.msra.mxu0 %v274_v52 }
  0x6f   :  { %534 = vmatprep.subr.mxu0 %v666_v0 }
  0x70   :  { %535 = vmatpush3.msra.mxu0 %v273_v53 }
  0x71   :  { %536 = vmatprep.subr.mxu0 %v666_v0 }
  0x72   :  { %537 = vmatpush3.msra.mxu0 %v272_v54 }
  0x73   :  { %538 = vmatprep.subr.mxu0 %v666_v0 }
  0x74   :  { %539 = vmatpush3.msra.mxu0 %v271_v55 }
 0x115   :  { %v170_v47 = vpop.f32.mrf.mxu0 }
 0x116   :  { %v171_v48 = vadd.f32 %v384_v46, %v170_v47 }
 0x117   :  { %v472_v49 = vpop.f32.mrf.mxu0 }
 0x118   :  { %v174_v50 = vmul.f32 0.4, %v171_v48 }
 0x11a   :  { %v175_v51 = vmax.f32 %v171_v48, %v174_v50 }
 0x11c   :  { %506 = vmatmul.mubr.f32.vlgmr.msra.gmra.mxu1 %v175_v51 }
 0x1dc   :  { %v265_v57 = vpop.f32.mrf.mxu1 }
 0x1dd   :  { %v266_v58 = vadd.f32 %v385_v56, %v265_v57 }
 0x1de   :  { %v507_v59 = vpop.f32.mrf.mxu1 }
 0x1df   :  { %v269_v60 = vmul.f32 0.4, %v266_v58 }
 0x1e1   :  { %v270_v61 = vmax.f32 %v266_v58, %v269_v60 }
 0x1e3   :  { %541 = vmatmul.mubr.f32.vlgmr.msra.gmra.mxu0 %v270_v61 }
 0x2a3   :  { %v360_v63 = vpop.f32.mrf.mxu0 }
 0x2a4   :  { %v361_v1 = vadd.f32 %v386_v62, %v360_v63 }
 0x2a5   :  { %v542_v2 = vpop.f32.mrf.mxu0 }
 0x2a6   :  { %v364_v0 = vmul.f32 0.4, %v361_v1 }
 0x2a8   :  { %v365_v3 = vmax.f32 %v361_v1, %v364_v0 }
 0x2aa   :  { %366 = vst [vmem:[#allocation10] sm:$0xff] %v365_v3 }
 0x2ab   :  { %643 = shalt.err (!%p640_p10)
}
 0x2ac   :  { %376 = dma.vmem_to_hbm [thread:$0]  %s374_s25, 128, %s803_s7, [#allocation4]  }
 0x2ad   :  { %658 = dma.done.wait [#allocation4], 128  }
 0x2ae   :  { %659 = vsyncadd [#allocation4], 4294967168 }
 0x2af   :  { %380 = vsyncpa [#allocation3], 1 }
 0x2b0   :  { %381 = vsyncpa [#allocation6], 1 }
 0x2b1   :  { %382 = vsyncpa [#allocation9], 1 }
 0x2b2   :  { %383 = vsyncpa [#allocation4], 1 }

</bundles_post_ra>
